<compile_context>
chip_gen: v6e
topology: v6e:2x2x1
jax: 0.10.0
libtpu: 0.0.40
codegen_flags: <defaults>
</compile_context>

<pallas_src>
import functools

import jax
import jax.numpy as jnp
import numpy as np
from jax.experimental import pallas as pl
from jax.experimental.pallas import tpu as pltpu


def _round_up(x, m):
    return (x + m - 1) // m * m


def _vmem_capacity_bytes():
    """Physical VMEM of the attached chip; conservative v7x default if unknown."""
    try:
        info = pltpu.get_tpu_info()
        for name in ("vmem_capacity_bytes", "vmem_size_bytes", "vmem_bytes"):
            v = getattr(info, name, None)
            if v:
                return int(v)
    except Exception:
        pass
    return 64 * 1024 * 1024


# ----------------------------- Pallas kernel --------------------------------
def decoder_att_kernel(
    x_ref, h_ref, c_ref, enc_ref,                       # activations (per batch tile)
    attn_wh_ref, attn_we_ref, attn_b_ref, v_ref,        # attention params
    w_x_ref, w_c_ref, w_h_ref, b_gate_ref,              # LSTM params (i|f|g|o columns)
    out_w_ref, out_b_ref,                               # outputNet params
    out_ref,                                            # packed [TB, slab_pad] output
    *, slab_pad, matmul_dtype,
):
    f32 = jnp.float32

    def mm(a, b):
        return jnp.dot(a.astype(matmul_dtype), b.astype(matmul_dtype),
                       preferred_element_type=f32)

    x = x_ref[...]                    # [TB, out_dim]   (matmul dtype)
    h = h_ref[...]                    # [TB, hid]       (matmul dtype)
    c = c_ref[...].astype(f32)        # [TB, hid]       f32 cell state
    enc = enc_ref[...]                # [TB, S, enc2]   (matmul dtype)
    tb, s, enc2 = enc.shape
    hid = h.shape[-1]
    out_dim = out_w_ref.shape[-1]

    # ---- attention: softmax_S( v . tanh(We@enc + Wh@h + b) ) ----
    e_h = mm(h, attn_wh_ref[...])                                       # [TB, hid] f32
    e_e = mm(enc.reshape(tb * s, enc2), attn_we_ref[...])               # [TB*S, hid] f32
    energy = jnp.tanh(e_e.reshape(tb, s, hid)
                      + e_h[:, None, :] + attn_b_ref[...])              # [TB, S, hid] f32
    # Lane-dense 2D scores: the whole softmax runs on [TB, S] (S on lanes).
    scores = jnp.sum(energy * v_ref[...], axis=-1)                      # [TB, S]
    scores = scores - jnp.max(scores, axis=-1, keepdims=True)
    ex = jnp.exp(scores)
    a = ex * pl.reciprocal(jnp.sum(ex, axis=-1, keepdims=True), approx=True)
    # Re-expand only for the weighting (one small relayout), accumulate in f32.
    context = jnp.sum(a[:, :, None] * enc.astype(f32), axis=1)          # [TB, enc2]

    # ---- single LSTM step: three dots, shared f32 accumulation ----
    gates = (mm(x, w_x_ref[...]) + mm(context, w_c_ref[...])
             + mm(h, w_h_ref[...]) + b_gate_ref[...])                   # [TB, 4*hid]
    i_g = jax.nn.sigmoid(gates[:, 0 * hid:1 * hid])
    f_g = jax.nn.sigmoid(gates[:, 1 * hid:2 * hid])
    g_g = jnp.tanh(gates[:, 2 * hid:3 * hid])
    o_g = jax.nn.sigmoid(gates[:, 3 * hid:4 * hid])
    c_new = f_g * c + i_g * g_g
    h_new = o_g * jnp.tanh(c_new)

    # ---- outputNet: Linear(hid -> output_dim) ----
    pred = mm(h_new, out_w_ref[...]) + out_b_ref[...]                   # [TB, out_dim]

    # ---- single lane-dense packed output slab: [pred | h_new | c_new | 0-pad] ----
    parts = [pred, h_new, c_new]
    pad = slab_pad - (out_dim + 2 * hid)
    if pad > 0:
        parts.append(jnp.zeros((tb, pad), f32))
    out_ref[...] = jnp.concatenate(parts, axis=-1).astype(out_ref.dtype)


# ------------------------------- wrapper -------------------------------------
def decoder_att_forward(x, hidden, cell, encoder_outputs, params,
                        matmul_dtype=jnp.bfloat16):
    """x: [B, out_dim], hidden: [B, 1, hid], cell: [1, B, hid],
    encoder_outputs: [B, S, enc2].  Returns (pred [B,1,out_dim],
    hidden [1,B,hid], cell [1,B,hid])."""
    B, out_dim = x.shape
    _, S, enc2 = encoder_outputs.shape
    hid = hidden.shape[-1]
    mdt = jnp.dtype(matmul_dtype)
    f32 = jnp.dtype(jnp.float32)

    slab_w = out_dim + 2 * hid
    slab_pad = _round_up(slab_w, 128)

    # Unit-dim reshapes are layout no-ops; no wrapper transposes / no batch padding.
    h2 = hidden.reshape(B, hid)
    c2 = cell.reshape(B, hid)
    enc = encoder_outputs

    attn_wh = params["attn_wh"]
    attn_we = params["attn_we"]
    w_x, w_c, w_h = params["w_ih_x"], params["w_ih_c"], params["w_hh"]
    out_w = params["out_w"]
    attn_b, b_gate, out_b = params["attn_b"], params["b_gate"], params["out_b"]
    v_row = params["attn_v"].reshape(1, hid)

    if mdt != f32:
        # bf16 matmul operands (f32 accumulation in kernel) on every generation;
        # also halves enc/weight DMA bytes.  Cell state stays f32 (elementwise only).
        x, h2, enc = x.astype(mdt), h2.astype(mdt), enc.astype(mdt)
        attn_wh, attn_we = attn_wh.astype(mdt), attn_we.astype(mdt)
        w_x, w_c, w_h = w_x.astype(mdt), w_c.astype(mdt), w_h.astype(mdt)
        out_w = out_w.astype(mdt)

    # ---- batch-tile selection from a per-chip VMEM budget ----
    w_it = mdt.itemsize
    weight_bytes = 2 * w_it * (hid * hid + enc2 * hid + out_dim * 4 * hid
                               + enc2 * 4 * hid + hid * 4 * hid + hid * out_dim)
    weight_bytes += 2 * 4 * (hid + 4 * hid + out_dim + hid)      # f32 biases + v (padded, small)

    def tile_bytes(tb):
        enc_blk = 2 * tb * S * enc2 * w_it                       # double-buffered enc tile
        act_blk = 2 * tb * (out_dim + hid) * w_it + 2 * tb * hid * 4
        out_blk = 2 * tb * slab_pad * 4
        # rough in-kernel intermediates: e_e/energy, f32 enc copy, scores, gates
        interm = tb * S * (2 * hid + enc2) * 4 + tb * (2 * S + 12 * hid) * 4
        return enc_blk + act_blk + out_blk + interm

    vmem_cap = _vmem_capacity_bytes()
    budget = int(vmem_cap * 0.75)                                # headroom for spills/scratch
    if B <= 8:
        TB = B                                                   # single small block (full dim)
    else:
        TB = min(256, _round_up((B + 1) // 2, 8))                # >=2 tiles -> both cores busy
        while TB > 8 and weight_bytes + tile_bytes(TB) > budget:
            TB -= 8
    num_tiles = pl.cdiv(B, TB)

    vmem_need = weight_bytes + tile_bytes(TB)
    vmem_limit = int(min(vmem_cap * 0.9, max(vmem_need + (8 << 20), 32 << 20)))

    def full_spec(arr):
        n = arr.ndim
        return pl.BlockSpec(arr.shape, lambda b, n=n: (0,) * n)

    in_specs = [
        pl.BlockSpec((TB, out_dim), lambda b: (b, 0)),           # x
        pl.BlockSpec((TB, hid), lambda b: (b, 0)),               # hidden
        pl.BlockSpec((TB, hid), lambda b: (b, 0)),               # cell
        pl.BlockSpec((TB, S, enc2), lambda b: (b, 0, 0)),        # encoder_outputs
        full_spec(attn_wh), full_spec(attn_we), full_spec(attn_b), full_spec(v_row),
        full_spec(w_x), full_spec(w_c), full_spec(w_h), full_spec(b_gate),
        full_spec(out_w), full_spec(out_b),
    ]
    out_specs = pl.BlockSpec((TB, slab_pad), lambda b: (b, 0))
    out_shape = jax.ShapeDtypeStruct((B, slab_pad), jnp.float32)

    kernel = functools.partial(decoder_att_kernel, slab_pad=slab_pad,
                               matmul_dtype=matmul_dtype)

    slab = pl.pallas_call(
        kernel,
        out_shape=out_shape,
        grid=(num_tiles,),
        in_specs=in_specs,
        out_specs=out_specs,
        compiler_params=pltpu.CompilerParams(
            dimension_semantics=("parallel",),
            vmem_limit_bytes=vmem_limit),
    )(
        x, h2, c2, enc,
        attn_wh, attn_we, attn_b, v_row,
        w_x, w_c, w_h, b_gate,
        out_w, out_b,
    )

    pred = slab[:, :out_dim][:, None, :]                         # [B, 1, out_dim]
    hidden_out = slab[None, :, out_dim:out_dim + hid]            # [1, B, hid]
    cell_out = slab[None, :, out_dim + hid:out_dim + 2 * hid]    # [1, B, hid]
    return pred, hidden_out, cell_out


# ------------------------ pure-JAX reference (checking) ----------------------
def decoder_att_reference(x, hidden, cell, encoder_outputs, params):
    B, S, enc2 = encoder_outputs.shape
    hid = hidden.shape[-1]
    h = hidden[:, 0, :]                                          # [B, hid]
    c = cell[0]                                                  # [B, hid]
    # attention
    e_h = h @ params["attn_wh"]                                  # [B, hid]
    e_e = jnp.einsum("bse,eh->bsh", encoder_outputs, params["attn_we"])
    energy = jnp.tanh(e_e + e_h[:, None, :] + params["attn_b"][0])
    scores = jnp.einsum("bsh,ho->bso", energy, params["attn_v"])[..., 0]  # [B, S]
    a = jax.nn.softmax(scores, axis=1)
    context = jnp.einsum("bs,bse->be", a, encoder_outputs)       # [B, enc2]
    # LSTM step
    gates = (x @ params["w_ih_x"] + context @ params["w_ih_c"]
             + h @ params["w_hh"] + params["b_gate"][0])
    i_g = jax.nn.sigmoid(gates[:, 0 * hid:1 * hid])
    f_g = jax.nn.sigmoid(gates[:, 1 * hid:2 * hid])
    g_g = jnp.tanh(gates[:, 2 * hid:3 * hid])
    o_g = jax.nn.sigmoid(gates[:, 3 * hid:4 * hid])
    c_new = f_g * c + i_g * g_g
    h_new = o_g * jnp.tanh(c_new)
    pred = h_new @ params["out_w"] + params["out_b"][0]
    return pred[:, None, :], h_new[None], c_new[None]


# --------------------------------- main --------------------------------------
def _make_params(key, enc2, hid_dim, output_dim):
    ks = jax.random.split(key, 10)
    f32 = jnp.float32
    scale = 0.1
    return {
        # attention: Linear(hid + enc2 -> hid) split into [hidden | enc] halves,
        # v: Linear(hid -> 1, bias=False)
        "attn_wh": scale * jax.random.normal(ks[0], (hid_dim, hid_dim), f32),
        "attn_we": scale * jax.random.normal(ks[1], (enc2, hid_dim), f32),
        "attn_b":  scale * jax.random.normal(ks[2], (1, hid_dim), f32),
        "attn_v":  scale * jax.random.normal(ks[3], (hid_dim, 1), f32),
        # LSTM(dec_input_dim -> hid), gate order i,f,g,o ; W_ih split into
        # [input | context] halves (cat order in forward), bias = b_ih + b_hh.
        "w_ih_x":  scale * jax.random.normal(ks[4], (output_dim, 4 * hid_dim), f32),
        "w_ih_c":  scale * jax.random.normal(ks[5], (enc2, 4 * hid_dim), f32),
        "w_hh":    scale * jax.random.normal(ks[6], (hid_dim, 4 * hid_dim), f32),
        "b_gate":  scale * jax.random.normal(ks[7], (1, 4 * hid_dim), f32),
        # outputNet: Linear(hid -> output_dim)
        "out_w":   scale * jax.random.normal(ks[8], (hid_dim, output_dim), f32),
        "out_b":   scale * jax.random.normal(ks[9], (1, output_dim), f32),
    }
    # TODO(synk): nn.Dropout is defined in __init__ but never applied in forward; omitted.


def _run_case(key, B, S, enc_hid_dim, hid_dim, output_dim, matmul_dtype, rtol, atol):
    enc2 = 2 * enc_hid_dim
    kp, k0, k1, k2, k3 = jax.random.split(key, 5)
    f32 = jnp.float32
    params = _make_params(kp, enc2, hid_dim, output_dim)
    x = jax.random.normal(k0, (B, output_dim), f32)
    hidden = jax.random.normal(k1, (B, 1, hid_dim), f32)
    cell = jax.random.normal(k2, (1, B, hid_dim), f32)
    encoder_outputs = jax.random.normal(k3, (B, S, enc2), f32)

    pred, h_new, c_new = jax.block_until_ready(
        decoder_att_forward(x, hidden, cell, encoder_outputs, params,
                            matmul_dtype=matmul_dtype))
    pred_r, h_r, c_r = decoder_att_reference(x, hidden, cell, encoder_outputs, params)

    assert pred.shape == (B, 1, output_dim)
    assert h_new.shape == (1, B, hid_dim) and c_new.shape == (1, B, hid_dim)
    np.testing.assert_allclose(np.asarray(pred), np.asarray(pred_r), rtol=rtol, atol=atol)
    np.testing.assert_allclose(np.asarray(h_new), np.asarray(h_r), rtol=rtol, atol=atol)
    np.testing.assert_allclose(np.asarray(c_new), np.asarray(c_r), rtol=rtol, atol=atol)


if __name__ == "__main__":
    key = jax.random.PRNGKey(0)
    k_a, k_b = jax.random.split(key)

    # Small single-tile case (module-sized): bf16 matmul default, and an f32 run
    # to verify the math path tightly (tolerance limited by approx reciprocal).
    _run_case(k_a, B=2, S=8, enc_hid_dim=16, hid_dim=32, output_dim=8,
              matmul_dtype=jnp.bfloat16, rtol=5e-2, atol=2e-2)
    _run_case(k_a, B=2, S=8, enc_hid_dim=16, hid_dim=32, output_dim=8,
              matmul_dtype=jnp.float32, rtol=2e-2, atol=5e-3)
    # Multi-tile grid case (2 batch tiles of 16 rows) exercising the tiled path.
    _run_case(k_b, B=32, S=16, enc_hid_dim=16, hid_dim=32, output_dim=8,
              matmul_dtype=jnp.bfloat16, rtol=5e-2, atol=2e-2)

    print("KERNEL_OK")
</pallas_src>

<mosaic_0001>
module attributes {stable_mosaic.version = 11 : i64} {
  func.func @decoder_att_kernel(%arg0: i32, %arg1: memref<2x8xbf16, #tpu.memory_space<vmem>>, %arg2: memref<2x32xbf16, #tpu.memory_space<vmem>>, %arg3: memref<2x32xf32, #tpu.memory_space<vmem>>, %arg4: memref<2x8x32xbf16, #tpu.memory_space<vmem>>, %arg5: memref<32x32xbf16, #tpu.memory_space<vmem>>, %arg6: memref<32x32xbf16, #tpu.memory_space<vmem>>, %arg7: memref<1x32xf32, #tpu.memory_space<vmem>>, %arg8: memref<1x32xf32, #tpu.memory_space<vmem>>, %arg9: memref<8x128xbf16, #tpu.memory_space<vmem>>, %arg10: memref<32x128xbf16, #tpu.memory_space<vmem>>, %arg11: memref<32x128xbf16, #tpu.memory_space<vmem>>, %arg12: memref<1x128xf32, #tpu.memory_space<vmem>>, %arg13: memref<32x8xbf16, #tpu.memory_space<vmem>>, %arg14: memref<1x8xf32, #tpu.memory_space<vmem>>, %arg15: memref<2x128xf32, #tpu.memory_space<vmem>>) attributes {dimension_semantics = [#tpu.dimension_semantics<parallel>], iteration_bounds = array<i64: 1>, scalar_prefetch = 0 : i64, scratch_operands = 0 : i64, tpu.core_type = #tpu.core_type<tc>, window_params = [{transform_indices = @transform_0, window_bounds = array<i64: 2, 8>}, {transform_indices = @transform_1, window_bounds = array<i64: 2, 32>}, {transform_indices = @transform_2, window_bounds = array<i64: 2, 32>}, {transform_indices = @transform_3, window_bounds = array<i64: 2, 8, 32>}, {pipeline_mode = #tpu.pipeline_mode<synchronous>, transform_indices = @transform_4, window_bounds = array<i64: 32, 32>}, {pipeline_mode = #tpu.pipeline_mode<synchronous>, transform_indices = @transform_5, window_bounds = array<i64: 32, 32>}, {pipeline_mode = #tpu.pipeline_mode<synchronous>, transform_indices = @transform_6, window_bounds = array<i64: 1, 32>}, {pipeline_mode = #tpu.pipeline_mode<synchronous>, transform_indices = @transform_7, window_bounds = array<i64: 1, 32>}, {pipeline_mode = #tpu.pipeline_mode<synchronous>, transform_indices = @transform_8, window_bounds = array<i64: 8, 128>}, {pipeline_mode = #tpu.pipeline_mode<synchronous>, transform_indices = @transform_9, window_bounds = array<i64: 32, 128>}, {pipeline_mode = #tpu.pipeline_mode<synchronous>, transform_indices = @transform_10, window_bounds = array<i64: 32, 128>}, {pipeline_mode = #tpu.pipeline_mode<synchronous>, transform_indices = @transform_11, window_bounds = array<i64: 1, 128>}, {pipeline_mode = #tpu.pipeline_mode<synchronous>, transform_indices = @transform_12, window_bounds = array<i64: 32, 8>}, {pipeline_mode = #tpu.pipeline_mode<synchronous>, transform_indices = @transform_13, window_bounds = array<i64: 1, 8>}, {transform_indices = @transform_14, window_bounds = array<i64: 2, 128>}]} {
    %c0 = arith.constant 0 : index
    %c0_0 = arith.constant 0 : index
    %0 = vector.load %arg1[%c0, %c0_0] : memref<2x8xbf16, #tpu.memory_space<vmem>>, vector<2x8xbf16>
    %c0_1 = arith.constant 0 : index
    %c0_2 = arith.constant 0 : index
    %1 = vector.load %arg2[%c0_1, %c0_2] : memref<2x32xbf16, #tpu.memory_space<vmem>>, vector<2x32xbf16>
    %c0_3 = arith.constant 0 : index
    %c0_4 = arith.constant 0 : index
    %2 = vector.load %arg3[%c0_3, %c0_4] : memref<2x32xf32, #tpu.memory_space<vmem>>, vector<2x32xf32>
    %c0_5 = arith.constant 0 : index
    %c0_6 = arith.constant 0 : index
    %c0_7 = arith.constant 0 : index
    %3 = vector.load %arg4[%c0_5, %c0_6, %c0_7] : memref<2x8x32xbf16, #tpu.memory_space<vmem>>, vector<2x8x32xbf16>
    %c0_8 = arith.constant 0 : index
    %c0_9 = arith.constant 0 : index
    %4 = vector.load %arg5[%c0_8, %c0_9] : memref<32x32xbf16, #tpu.memory_space<vmem>>, vector<32x32xbf16>
    %cst = arith.constant dense<0.000000e+00> : vector<2x32xf32>
    %5 = tpu.matmul %1, %4, %cst {dimension_numbers = #tpu.dot_dimension_numbers<[1], [0], [0], [1], [0, 0, 1, 1], [], []>} : vector<2x32xbf16>, vector<32x32xbf16>, vector<2x32xf32> -> vector<2x32xf32>
    %6 = vector.shape_cast %3 : vector<2x8x32xbf16> to vector<16x32xbf16>
    %c0_10 = arith.constant 0 : index
    %c0_11 = arith.constant 0 : index
    %7 = vector.load %arg6[%c0_10, %c0_11] : memref<32x32xbf16, #tpu.memory_space<vmem>>, vector<32x32xbf16>
    %cst_12 = arith.constant dense<0.000000e+00> : vector<16x32xf32>
    %8 = tpu.matmul %6, %7, %cst_12 {dimension_numbers = #tpu.dot_dimension_numbers<[1], [0], [0], [1], [0, 0, 1, 1], [], []>} : vector<16x32xbf16>, vector<32x32xbf16>, vector<16x32xf32> -> vector<16x32xf32>
    %9 = vector.shape_cast %8 : vector<16x32xf32> to vector<2x8x32xf32>
    %10 = vector.shape_cast %5 : vector<2x32xf32> to vector<2x1x32xf32>
    %11 = vector.broadcast %10 : vector<2x1x32xf32> to vector<2x8x32xf32>
    %12 = arith.addf %9, %11 : vector<2x8x32xf32>
    %c0_13 = arith.constant 0 : index
    %c0_14 = arith.constant 0 : index
    %13 = vector.load %arg7[%c0_13, %c0_14] : memref<1x32xf32, #tpu.memory_space<vmem>>, vector<1x32xf32>
    %14 = vector.shape_cast %13 : vector<1x32xf32> to vector<1x1x32xf32>
    %15 = vector.broadcast %14 : vector<1x1x32xf32> to vector<2x8x32xf32>
    %16 = arith.addf %12, %15 : vector<2x8x32xf32>
    %17 = math.tanh %16 : vector<2x8x32xf32>
    %c0_15 = arith.constant 0 : index
    %c0_16 = arith.constant 0 : index
    %18 = vector.load %arg8[%c0_15, %c0_16] : memref<1x32xf32, #tpu.memory_space<vmem>>, vector<1x32xf32>
    %19 = vector.shape_cast %18 : vector<1x32xf32> to vector<1x1x32xf32>
    %20 = vector.broadcast %19 : vector<1x1x32xf32> to vector<2x8x32xf32>
    %21 = arith.mulf %17, %20 : vector<2x8x32xf32>
    %cst_17 = arith.constant dense<0.000000e+00> : vector<2x8xf32>
    %22 = vector.multi_reduction <add>, %21, %cst_17 [2] : vector<2x8x32xf32> to vector<2x8xf32>
    %cst_18 = arith.constant dense<0xFF800000> : vector<2xf32>
    %23 = vector.multi_reduction <maximumf>, %22, %cst_18 [1] : vector<2x8xf32> to vector<2xf32>
    %24 = vector.shape_cast %23 : vector<2xf32> to vector<2x1xf32>
    %25 = vector.broadcast %24 : vector<2x1xf32> to vector<2x8xf32>
    %26 = arith.subf %22, %25 : vector<2x8xf32>
    %27 = math.exp %26 : vector<2x8xf32>
    %cst_19 = arith.constant dense<0.000000e+00> : vector<2xf32>
    %28 = vector.multi_reduction <add>, %27, %cst_19 [1] : vector<2x8xf32> to vector<2xf32>
    %29 = vector.shape_cast %28 : vector<2xf32> to vector<2x1xf32>
    %30 = tpu.reciprocal %29 {approx = true} : vector<2x1xf32> -> vector<2x1xf32>
    %31 = vector.broadcast %30 : vector<2x1xf32> to vector<2x8xf32>
    %32 = arith.mulf %27, %31 : vector<2x8xf32>
    %33 = vector.shape_cast %32 : vector<2x8xf32> to vector<2x8x1xf32>
    %34 = arith.extf %3 : vector<2x8x32xbf16> to vector<2x8x32xf32>
    %35 = vector.broadcast %33 : vector<2x8x1xf32> to vector<2x8x32xf32>
    %36 = arith.mulf %35, %34 : vector<2x8x32xf32>
    %cst_20 = arith.constant dense<0.000000e+00> : vector<2x32xf32>
    %37 = vector.multi_reduction <add>, %36, %cst_20 [1] : vector<2x8x32xf32> to vector<2x32xf32>
    %c0_21 = arith.constant 0 : index
    %c0_22 = arith.constant 0 : index
    %38 = vector.load %arg9[%c0_21, %c0_22] : memref<8x128xbf16, #tpu.memory_space<vmem>>, vector<8x128xbf16>
    %cst_23 = arith.constant dense<0.000000e+00> : vector<2x128xf32>
    %39 = tpu.matmul %0, %38, %cst_23 {dimension_numbers = #tpu.dot_dimension_numbers<[1], [0], [0], [1], [0, 0, 1, 1], [], []>} : vector<2x8xbf16>, vector<8x128xbf16>, vector<2x128xf32> -> vector<2x128xf32>
    %c0_24 = arith.constant 0 : index
    %c0_25 = arith.constant 0 : index
    %40 = vector.load %arg10[%c0_24, %c0_25] : memref<32x128xbf16, #tpu.memory_space<vmem>>, vector<32x128xbf16>
    %41 = arith.truncf %37 : vector<2x32xf32> to vector<2x32xbf16>
    %cst_26 = arith.constant dense<0.000000e+00> : vector<2x128xf32>
    %42 = tpu.matmul %41, %40, %cst_26 {dimension_numbers = #tpu.dot_dimension_numbers<[1], [0], [0], [1], [0, 0, 1, 1], [], []>} : vector<2x32xbf16>, vector<32x128xbf16>, vector<2x128xf32> -> vector<2x128xf32>
    %43 = arith.addf %39, %42 : vector<2x128xf32>
    %c0_27 = arith.constant 0 : index
    %c0_28 = arith.constant 0 : index
    %44 = vector.load %arg11[%c0_27, %c0_28] : memref<32x128xbf16, #tpu.memory_space<vmem>>, vector<32x128xbf16>
    %cst_29 = arith.constant dense<0.000000e+00> : vector<2x128xf32>
    %45 = tpu.matmul %1, %44, %cst_29 {dimension_numbers = #tpu.dot_dimension_numbers<[1], [0], [0], [1], [0, 0, 1, 1], [], []>} : vector<2x32xbf16>, vector<32x128xbf16>, vector<2x128xf32> -> vector<2x128xf32>
    %46 = arith.addf %43, %45 : vector<2x128xf32>
    %c0_30 = arith.constant 0 : index
    %c0_31 = arith.constant 0 : index
    %47 = vector.load %arg12[%c0_30, %c0_31] : memref<1x128xf32, #tpu.memory_space<vmem>>, vector<1x128xf32>
    %48 = vector.broadcast %47 : vector<1x128xf32> to vector<2x128xf32>
    %49 = arith.addf %46, %48 : vector<2x128xf32>
    %50 = vector.extract_strided_slice %49 {offsets = [0, 0], sizes = [2, 32], strides = [1, 1]} : vector<2x128xf32> to vector<2x32xf32>
    %51 = arith.negf %50 : vector<2x32xf32>
    %52 = math.exp %51 : vector<2x32xf32>
    %cst_32 = arith.constant 1.000000e+00 : f32
    %53 = vector.broadcast %cst_32 : f32 to vector<2x32xf32>
    %54 = arith.addf %53, %52 : vector<2x32xf32>
    %55 = arith.divf %53, %54 : vector<2x32xf32>
    %56 = vector.extract_strided_slice %49 {offsets = [0, 32], sizes = [2, 32], strides = [1, 1]} : vector<2x128xf32> to vector<2x32xf32>
    %57 = arith.negf %56 : vector<2x32xf32>
    %58 = math.exp %57 : vector<2x32xf32>
    %cst_33 = arith.constant 1.000000e+00 : f32
    %59 = vector.broadcast %cst_33 : f32 to vector<2x32xf32>
    %60 = arith.addf %59, %58 : vector<2x32xf32>
    %61 = arith.divf %59, %60 : vector<2x32xf32>
    %62 = vector.extract_strided_slice %49 {offsets = [0, 64], sizes = [2, 32], strides = [1, 1]} : vector<2x128xf32> to vector<2x32xf32>
    %63 = math.tanh %62 : vector<2x32xf32>
    %64 = vector.extract_strided_slice %49 {offsets = [0, 96], sizes = [2, 32], strides = [1, 1]} : vector<2x128xf32> to vector<2x32xf32>
    %65 = arith.negf %64 : vector<2x32xf32>
    %66 = math.exp %65 : vector<2x32xf32>
    %cst_34 = arith.constant 1.000000e+00 : f32
    %67 = vector.broadcast %cst_34 : f32 to vector<2x32xf32>
    %68 = arith.addf %67, %66 : vector<2x32xf32>
    %69 = arith.divf %67, %68 : vector<2x32xf32>
    %70 = arith.mulf %61, %2 : vector<2x32xf32>
    %71 = arith.mulf %55, %63 : vector<2x32xf32>
    %72 = arith.addf %70, %71 : vector<2x32xf32>
    %73 = math.tanh %72 : vector<2x32xf32>
    %74 = arith.mulf %69, %73 : vector<2x32xf32>
    %c0_35 = arith.constant 0 : index
    %c0_36 = arith.constant 0 : index
    %75 = vector.load %arg13[%c0_35, %c0_36] : memref<32x8xbf16, #tpu.memory_space<vmem>>, vector<32x8xbf16>
    %76 = arith.truncf %74 : vector<2x32xf32> to vector<2x32xbf16>
    %cst_37 = arith.constant dense<0.000000e+00> : vector<2x8xf32>
    %77 = tpu.matmul %76, %75, %cst_37 {dimension_numbers = #tpu.dot_dimension_numbers<[1], [0], [0], [1], [0, 0, 1, 1], [], []>} : vector<2x32xbf16>, vector<32x8xbf16>, vector<2x8xf32> -> vector<2x8xf32>
    %c0_38 = arith.constant 0 : index
    %c0_39 = arith.constant 0 : index
    %78 = vector.load %arg14[%c0_38, %c0_39] : memref<1x8xf32, #tpu.memory_space<vmem>>, vector<1x8xf32>
    %79 = vector.broadcast %78 : vector<1x8xf32> to vector<2x8xf32>
    %80 = arith.addf %77, %79 : vector<2x8xf32>
    %cst_40 = arith.constant 0.000000e+00 : f32
    %81 = vector.broadcast %cst_40 : f32 to vector<2x56xf32>
    %82 = tpu.concatenate %80, %74, %72, %81 in 1 : vector<2x8xf32>, vector<2x32xf32>, vector<2x32xf32>, vector<2x56xf32> -> vector<2x128xf32>
    %c0_41 = arith.constant 0 : index
    %c0_42 = arith.constant 0 : index
    %83 = vector.load %arg15[%c0_41, %c0_42] : memref<2x128xf32, #tpu.memory_space<vmem>>, vector<2x128xf32>
    tpu.vector_store %arg15[%c0_41, %c0_42], %82 {strides = array<i32>} : memref<2x128xf32, #tpu.memory_space<vmem>>, vector<2x128xf32>,
    return
  }
  func.func @transform_0(%arg0: i32) -> (i32, i32) {
    %c0_i32 = arith.constant 0 : i32
    %c0_i32_0 = arith.constant 0 : i32
    return %arg0, %c0_i32 : i32, i32
  }
  func.func @transform_1(%arg0: i32) -> (i32, i32) {
    %c0_i32 = arith.constant 0 : i32
    %c0_i32_0 = arith.constant 0 : i32
    return %arg0, %c0_i32 : i32, i32
  }
  func.func @transform_2(%arg0: i32) -> (i32, i32) {
    %c0_i32 = arith.constant 0 : i32
    %c0_i32_0 = arith.constant 0 : i32
    return %arg0, %c0_i32 : i32, i32
  }
  func.func @transform_3(%arg0: i32) -> (i32, i32, i32) {
    %c0_i32 = arith.constant 0 : i32
    %c0_i32_0 = arith.constant 0 : i32
    %c0_i32_1 = arith.constant 0 : i32
    return %arg0, %c0_i32, %c0_i32_0 : i32, i32, i32
  }
  func.func @transform_4(%arg0: i32) -> (i32, i32) {
    %c0_i32 = arith.constant 0 : i32
    %c0_i32_0 = arith.constant 0 : i32
    %c0_i32_1 = arith.constant 0 : i32
    return %c0_i32, %c0_i32_0 : i32, i32
  }
  func.func @transform_5(%arg0: i32) -> (i32, i32) {
    %c0_i32 = arith.constant 0 : i32
    %c0_i32_0 = arith.constant 0 : i32
    %c0_i32_1 = arith.constant 0 : i32
    return %c0_i32, %c0_i32_0 : i32, i32
  }
  func.func @transform_6(%arg0: i32) -> (i32, i32) {
    %c0_i32 = arith.constant 0 : i32
    %c0_i32_0 = arith.constant 0 : i32
    %c0_i32_1 = arith.constant 0 : i32
    return %c0_i32, %c0_i32_0 : i32, i32
  }
  func.func @transform_7(%arg0: i32) -> (i32, i32) {
    %c0_i32 = arith.constant 0 : i32
    %c0_i32_0 = arith.constant 0 : i32
    %c0_i32_1 = arith.constant 0 : i32
    return %c0_i32, %c0_i32_0 : i32, i32
  }
  func.func @transform_8(%arg0: i32) -> (i32, i32) {
    %c0_i32 = arith.constant 0 : i32
    %c0_i32_0 = arith.constant 0 : i32
    %c0_i32_1 = arith.constant 0 : i32
    return %c0_i32, %c0_i32_0 : i32, i32
  }
  func.func @transform_9(%arg0: i32) -> (i32, i32) {
    %c0_i32 = arith.constant 0 : i32
    %c0_i32_0 = arith.constant 0 : i32
    %c0_i32_1 = arith.constant 0 : i32
    return %c0_i32, %c0_i32_0 : i32, i32
  }
  func.func @transform_10(%arg0: i32) -> (i32, i32) {
    %c0_i32 = arith.constant 0 : i32
    %c0_i32_0 = arith.constant 0 : i32
    %c0_i32_1 = arith.constant 0 : i32
    return %c0_i32, %c0_i32_0 : i32, i32
  }
  func.func @transform_11(%arg0: i32) -> (i32, i32) {
    %c0_i32 = arith.constant 0 : i32
    %c0_i32_0 = arith.constant 0 : i32
    %c0_i32_1 = arith.constant 0 : i32
    return %c0_i32, %c0_i32_0 : i32, i32
  }
  func.func @transform_12(%arg0: i32) -> (i32, i32) {
    %c0_i32 = arith.constant 0 : i32
    %c0_i32_0 = arith.constant 0 : i32
    %c0_i32_1 = arith.constant 0 : i32
    return %c0_i32, %c0_i32_0 : i32, i32
  }
  func.func @transform_13(%arg0: i32) -> (i32, i32) {
    %c0_i32 = arith.constant 0 : i32
    %c0_i32_0 = arith.constant 0 : i32
    %c0_i32_1 = arith.constant 0 : i32
    return %c0_i32, %c0_i32_0 : i32, i32
  }
  func.func @transform_14(%arg0: i32) -> (i32, i32) {
    %c0_i32 = arith.constant 0 : i32
    %c0_i32_0 = arith.constant 0 : i32
    return %arg0, %c0_i32 : i32, i32
  }
}

</mosaic_0001>

<bundles_post_ra>
// kernel: tpu_custom_call.1
= control target key start
LH: loop header
LB: loop body
LE: loop exit
PB: predicated region body
PF: predicated region fallthrough
CT: control target
= control target key end

     0   :  { %19 = vsyncpa [#allocation3], 0  ;;  %s1331_s0 = inlined_call_operand.hbm [shape: bf16[2,8], index: 0, kind: input, shape index: {}]   ;;  %s1332_s1 = inlined_call_operand.hbm [shape: bf16[2,32], index: 1, kind: input, shape index: {}]   ;;  %s1333_s2 = inlined_call_operand.hbm [shape: f32[2,32], index: 2, kind: input, shape index: {}]   ;;  %s1334_s3 = inlined_call_operand.hbm [shape: bf16[2,8,32], index: 3, kind: input, shape index: {}]   ;;  %s1335_s4 = inlined_call_operand.vmem [shape: bf16[32,32], index: 4, kind: input, shape index: {}]   ;;  %s1336_s5 = inlined_call_operand.hbm [shape: bf16[32,32], index: 5, kind: input, shape index: {}]   ;;  %s1337_s6 = inlined_call_operand.hbm [shape: f32[1,32], index: 6, kind: input, shape index: {}]   ;;  %s1338_s7 = inlined_call_operand.hbm [shape: f32[1,32], index: 7, kind: input, shape index: {}]   ;;  %s1339_s8 = inlined_call_operand.hbm [shape: bf16[8,128], index: 8, kind: input, shape index: {}]   ;;  %s1340_s9 = inlined_call_operand.vmem [shape: bf16[32,128], index: 9, kind: input, shape index: {}]   ;;  %s1341_s10 = inlined_call_operand.hbm [shape: bf16[32,128], index: 10, kind: input, shape index: {}]   ;;  %s1342_s11 = inlined_call_operand.vmem [shape: f32[1,128], index: 11, kind: input, shape index: {}]   ;;  %s1343_s12 = inlined_call_operand.vmem [shape: bf16[32,8], index: 12, kind: input, shape index: {}]   ;;  %s1344_s13 = inlined_call_operand.vmem [shape: f32[1,8], index: 13, kind: input, shape index: {}]   ;;  %s1345_s14 = inlined_call_operand.hbm [shape: f32[2,128], index: 14, kind: output, shape index: {}]  }
   0x1   :  { %20 = vsyncpa [#allocation6], 0 }
   0x2   :  { %21 = vsyncpa [#allocation9], 0 }
   0x3   :  { %22 = vsyncpa [#allocation12], 0 }
   0x4   :  { %23 = vsyncpa [#allocation15], 0 }
   0x5   :  { %24 = vsyncpa [#allocation4], 0  ;;  %s1109_s29 = smov [#allocation5]   ;;  %s1110_s15 = smov [#allocation8]  }
   0x6   :  { %s41_s30 = sshll.u32 %s1109_s29, 4  ;;  %s60_s16 = sshll.u32 %s1110_s15, 4  ;;  %s42_s30 = int_to_ptr.vmem [resolvable:$true] %s41_s30  ;;  %s61_s16 = int_to_ptr.vmem [resolvable:$true] %s60_s16 }
   0x7   :  { %s905_s17 = scalar_lea.vmem %s42_s30, 16  ;;  %s909_s18 = scalar_lea.vmem %s42_s30, 32 }
   0x8   :  { %p906_p0 = scmp.ne.s32.totalorder %s42_s30, %s905_s17  ;;  %p910_p1 = scmp.lt.s32.totalorder %s42_s30, %s42_s30 }
   0x9   :  { %p911_p2 = scmp.lt.s32.totalorder %s909_s18, %s905_s17 }
   0xb   :  { %p912_p3 = por %p911_p2, %p910_p1 }
   0xd   :  { %p913_p4 = pnand %p912_p3, %p906_p0 }
   0xf   :  { %916 = shalt.err (!%p913_p4)
}
  0x10   :  { %44 = dma.hbm_to_vmem [thread:$0]  %s1332_s1, 16, %s42_s30, [#allocation6]  }
  0x11   :  { %s925_s21 = scalar_lea.vmem %s61_s16, 128  ;;  %p930_p6 = scmp.lt.s32.totalorder %s61_s16, %s61_s16 }
  0x12   :  { %p926_p5 = scmp.ne.s32.totalorder %s61_s16, %s925_s21  ;;  %p931_p7 = scmp.lt.s32.totalorder %s925_s21, %s925_s21 }
  0x14   :  { %p932_p8 = por %p931_p7, %p930_p6 }
  0x16   :  { %p933_p9 = pnand %p932_p8, %p926_p5 }
  0x18   :  { %936 = shalt.err (!%p933_p9)
}
  0x19   :  { %s1111_s22 = smov 64   ;;  %s1112_s23 = smov 4  }
  0x1a   :  { %66 = dma.hbm_to_vmem [thread:$0]  %s1334_s3, 128, %s61_s16, [#allocation9], %s1111_s22, %s1111_s22, %s1112_s23  }
  0x1b   :  { %s1113_s26 = smov [#allocation11]   ;;  %s1114_s28 = smov [#allocation14]  }
  0x1c   :  { %s87_s27 = sshll.u32 %s1113_s26, 4  ;;  %s107_s1 = sshll.u32 %s1114_s28, 4  ;;  %s88_s27 = int_to_ptr.vmem [resolvable:$true] %s87_s27  ;;  %s108_s1 = int_to_ptr.vmem [resolvable:$true] %s107_s1 }
  0x1d   :  { %s945_s29 = scalar_lea.vmem %s88_s27, 16  ;;  %s949_s30 = scalar_lea.vmem %s88_s27, 32 }
  0x1e   :  { %p946_p10 = scmp.ne.s32.totalorder %s88_s27, %s945_s29  ;;  %p950_p11 = scmp.lt.s32.totalorder %s88_s27, %s88_s27 }
  0x1f   :  { %p951_p12 = scmp.lt.s32.totalorder %s949_s30, %s945_s29 }
  0x21   :  { %p952_p13 = por %p951_p12, %p950_p11 }
  0x23   :  { %p953_p0 = pnand %p952_p13, %p946_p10 }
  0x25   :  { %956 = shalt.err (!%p953_p0)
}
  0x26   :  { %90 = dma.hbm_to_vmem [thread:$0]  %s1337_s6, 16, %s88_s27, [#allocation12]  }
  0x27   :  { %s965_s18 = scalar_lea.vmem %s108_s1, 64  ;;  %p970_p2 = scmp.lt.s32.totalorder %s108_s1, %s108_s1 }
  0x28   :  { %p966_p1 = scmp.ne.s32.totalorder %s108_s1, %s965_s18  ;;  %p971_p3 = scmp.lt.s32.totalorder %s965_s18, %s965_s18 }
  0x2a   :  { %p972_p4 = por %p971_p3, %p970_p2 }
  0x2c   :  { %p973_p5 = pnand %p972_p4, %p966_p1 }
  0x2e   :  { %976 = shalt.err (!%p973_p5)
}
  0x2f   :  { %110 = dma.hbm_to_vmem [thread:$0]  %s1339_s8, 64, %s108_s1, [#allocation15]  }
  0x30   :  { %s1115_s19 = smov [#allocation2]   ;;  %s1116_s21 = smov [#allocation7]  }
  0x31   :  { %s31_s20 = sshll.u32 %s1115_s19, 4  ;;  %s51_s24 = sshll.u32 %s1116_s21, 4  ;;  %s32_s20 = int_to_ptr.vmem [resolvable:$true] %s31_s20  ;;  %s52_s24 = int_to_ptr.vmem [resolvable:$true] %s51_s24 }
  0x32   :  { %s985_s25 = scalar_lea.vmem %s32_s20, 16  ;;  %s989_s6 = scalar_lea.vmem %s32_s20, 32 }
  0x33   :  { %p986_p6 = scmp.ne.s32.totalorder %s32_s20, %s985_s25  ;;  %p990_p7 = scmp.lt.s32.totalorder %s32_s20, %s32_s20 }
  0x34   :  { %p991_p8 = scmp.lt.s32.totalorder %s989_s6, %s985_s25 }
  0x36   :  { %p992_p9 = por %p991_p8, %p990_p7 }
  0x38   :  { %p993_p10 = pnand %p992_p9, %p986_p6 }
  0x3a   :  { %996 = shalt.err (!%p993_p10)
}
  0x3b   :  { %34 = dma.hbm_to_vmem [thread:$0]  %s1331_s0, 16, %s32_s20, [#allocation3]  }
  0x3c   :  { %s1005_s28 = scalar_lea.vmem %s52_s24, 32  ;;  %p1010_p12 = scmp.lt.s32.totalorder %s52_s24, %s52_s24 }
  0x3d   :  { %p1006_p11 = scmp.ne.s32.totalorder %s52_s24, %s1005_s28  ;;  %p1011_p13 = scmp.lt.s32.totalorder %s1005_s28, %s1005_s28 }
  0x3f   :  { %p1012_p0 = por %p1011_p13, %p1010_p12 }
  0x41   :  { %p1013_p1 = pnand %p1012_p0, %p1006_p11 }
  0x43   :  { %1016 = shalt.err (!%p1013_p1)
}
  0x44   :  { %54 = dma.hbm_to_vmem [thread:$0]  %s1333_s2, 32, %s52_s24, [#allocation6]  }
  0x45   :  { %s1117_s29 = smov [#allocation10]   ;;  %s1118_s15 = smov [#allocation13]  }
  0x46   :  { %s74_s30 = sshll.u32 %s1117_s29, 4  ;;  %s97_s17 = sshll.u32 %s1118_s15, 4  ;;  %s75_s30 = int_to_ptr.vmem [resolvable:$true] %s74_s30  ;;  %s98_s17 = int_to_ptr.vmem [resolvable:$true] %s97_s17 }
  0x47   :  { %s1025_s18 = scalar_lea.vmem %s75_s30, 256  ;;  %p1030_p3 = scmp.lt.s32.totalorder %s75_s30, %s75_s30 }
  0x48   :  { %p1026_p2 = scmp.ne.s32.totalorder %s75_s30, %s1025_s18  ;;  %p1031_p4 = scmp.lt.s32.totalorder %s1025_s18, %s1025_s18 }
  0x4a   :  { %p1032_p5 = por %p1031_p4, %p1030_p3 }
  0x4c   :  { %p1033_p6 = pnand %p1032_p5, %p1026_p2 }
  0x4e   :  { %1036 = shalt.err (!%p1033_p6)
}
  0x4f   :  { %80 = dma.hbm_to_vmem [thread:$0]  %s1336_s5, 256, %s75_s30, [#allocation9], %s1111_s22, %s1111_s22, %s1112_s23  }
  0x50   :  { %s1045_s2 = scalar_lea.vmem %s98_s17, 16  ;;  %s1049_s16 = scalar_lea.vmem %s98_s17, 32 }
  0x51   :  { %p1046_p7 = scmp.ne.s32.totalorder %s98_s17, %s1045_s2  ;;  %p1050_p8 = scmp.lt.s32.totalorder %s98_s17, %s98_s17 }
  0x52   :  { %p1051_p9 = scmp.lt.s32.totalorder %s1049_s16, %s1045_s2 }
  0x54   :  { %p1052_p10 = por %p1051_p9, %p1050_p8 }
  0x56   :  { %p1053_p11 = pnand %p1052_p10, %p1046_p7 }
  0x58   :  { %1056 = shalt.err (!%p1053_p11)
}
  0x59   :  { %100 = dma.hbm_to_vmem [thread:$0]  %s1338_s7, 16, %s98_s17, [#allocation12]  }
  0x5a   :  { %s1119_s21 = smov [#allocation16]  }
  0x5b   :  { %s118_s24 = sshll.u32 %s1119_s21, 4  ;;  %s119_s24 = int_to_ptr.vmem [resolvable:$true] %s118_s24 }
  0x5c   :  { %s1065_s25 = scalar_lea.vmem %s119_s24, 256  ;;  %p1070_p13 = scmp.lt.s32.totalorder %s119_s24, %s119_s24 }
  0x5d   :  { %p1066_p12 = scmp.ne.s32.totalorder %s119_s24, %s1065_s25  ;;  %p1071_p0 = scmp.lt.s32.totalorder %s1065_s25, %s1065_s25 }
  0x5f   :  { %p1072_p1 = por %p1071_p0, %p1070_p13 }
  0x61   :  { %p1073_p2 = pnand %p1072_p1, %p1066_p12 }
  0x63   :  { %1076 = shalt.err (!%p1073_p2)
}
  0x64   :  { %124 = dma.hbm_to_vmem [thread:$0]  %s1341_s10, 256, %s119_s24, [#allocation15], %s1111_s22, %s1111_s22, %s1112_s23  }
  0x65   :  { %1097 = dma.done.wait [#allocation3], 16  }
  0x66   :  { %1098 = vsyncadd [#allocation3], 4294967280 }
  0x67   :  { %1099 = dma.done.wait [#allocation6], 48  }
  0x68   :  { %1100 = vsyncadd [#allocation6], 4294967248 }
  0x69   :  { %1101 = dma.done.wait [#allocation9], 384  }
  0x6a   :  { %1102 = vsyncadd [#allocation9], 4294966912 }
  0x6b   :  { %1103 = dma.done.wait [#allocation12], 32  }
  0x6c   :  { %1104 = vsyncadd [#allocation12], 4294967264 }
  0x6d   :  { %1105 = dma.done.wait [#allocation15], 320  }
  0x6e   :  { %1106 = vsyncadd [#allocation15], 4294966976  ;;  %v1120_v0 = vmov 0.0   ;;  %vm1121_vm0 = vmmov 0   ;;  %v867_v1 = vld [vmem:[%s1335_s4 + $0x8] sm:$0xff]   ;;  %v868_v2 = vld [vmem:[#allocation10 + $0x8] sm:$0xff]   ;;  %v293_v9 = vlaneseq }
  0x6f   :  { %800 = vmatprep.subr.bf16.mxu0 %v1120_v0  ;;  %808 = vmatprep.subr.bf16.mxu1 %v1120_v0  ;;  %v869_v3 = vld [vmem:[%s1335_s4] sm:$0xff]   ;;  %v870_v4 = vld [vmem:[#allocation10] sm:$0xff]   ;;  %vm180_vm1 = vcmask 261120   ;;  %v1122_v7 = vmov 1966171168   ;;  %vm362_vm2 = vcmask 1041409  }
  0x70   :  { %804 = vmatprep.mubr.msk.bf16.mxu0 %vm1121_vm0, %v1120_v0  ;;  %812 = vmatprep.mubr.msk.bf16.mxu1 %vm1121_vm0, %v1120_v0  ;;  %v1253_v5 = vld [vmem:[#allocation5] sm:$0x1]  ;;  %v1255_v6 = vld [vmem:[#allocation8] sm:$0xff]   ;;  %v291_v8 = vunpack.c.l.s4 %v1122_v7  ;;  %v1267_v11 = vshrl.u32 %v293_v9, 7  ;;  %v768_v25 = vld [vmem:[#allocation11] ss:$0 sm:$0xff] }
  0x71   :  { %801 = vmatpush3.bf16.msra.mxu0 %v867_v1  ;;  %809 = vmatpush3.bf16.msra.mxu1 %v868_v2  ;;  %v769_v33 = vld [vmem:[#allocation13] ss:$0 sm:$0xff]  ;;  %v353_v40 = vand.u32 127, %v293_v9  ;;  %vm365_vm3 = vcmask 58368   ;;  %v1123_v48 = vmov 0   ;;  %vm521_vm4 = vcmask 1043456  }
  0x72   :  { %802 = vmatprep.subr.bf16.mxu0 %v1120_v0  ;;  %810 = vmatprep.subr.bf16.mxu1 %v1120_v0  ;;  %v292_v10 = vunpack.c.0.s8 %v291_v8  ;;  %v1271_v16 = vsub.s32 0, %v1267_v11  ;;  %v376_v49 = vsub.s32 1, %v1267_v11  ;;  %vm517_vm5 = vcmask 64512   ;;  %s1124_s1 = smov 32   ;;  %s1125_s18 = smov 40  }
  0x73   :  { %v356_v42 = vsub.s32 %v353_v40, %v1267_v11  ;;  %866 = vset.pattern.permute.xlu0 %v1123_v48  ;;  %865 = vset.pattern.permute.xlu1 %v1123_v48  ;;  %v874_v40 = vld [vmem:[#allocation16 + $0x8] sm:$0xff]   ;;  %s1126_s0 = smov 8   ;;  %vm737_vm6 = vcmask 326656   ;;  %vm739_vm7 = vcmask 588800  }
  0x74   :  { %v295_v12 = vsub.s32 %v292_v10, %v1267_v11  ;;  %v872_v10 = vld [vmem:[%s1340_s9 + $0x8] sm:$0xff]   ;;  %v873_v11 = vld [vmem:[%s1340_s9] sm:$0xff]  }
  0x75   :  { %803 = vmatpush3.bf16.msra.mxu0 %v869_v3  ;;  %811 = vmatpush3.bf16.msra.mxu1 %v870_v4 }
  0x76   :  { %816 = vmatprep.subr.bf16.mxu0 %v1120_v0  ;;  %824 = vmatprep.subr.bf16.mxu1 %v1120_v0 }
  0x78   :  { %805 = vmatmul.mubr.msk.bf16.vlgmr.msra.gmra.mxu0 %vm180_vm1, %v1253_v5  ;;  %813 = vmatmul.mubr.msk.bf16.vlgmr.msra.gmra.mxu1 %vm180_vm1, %v1255_v6 }
  0x79   :  { %820 = vmatprep.mubr.msk.bf16.mxu0 %vm1121_vm0, %v1120_v0  ;;  %826 = vmatprep.mubr.msk.bf16.mxu1 %vm1121_vm0, %v1120_v0 }
  0x7a   :  { %817 = vmatpush3.bf16.msra.mxu0 %v872_v10 }
  0x7b   :  { %818 = vmatprep.subr.bf16.mxu0 %v1120_v0 }
  0x7e   :  { %819 = vmatpush3.bf16.msra.mxu0 %v873_v11 }
  0x7f   :  { %830 = vmatprep.subr.bf16.mxu0 %v1120_v0 }
 0x138   :  { %v218_v13 = vpop.f32.mrf.mxu0  ;;  %v282_v15 = vpop.f32.mrf.mxu1 }
 0x139   :  { %v296_v14 = vrot.slane %v218_v13, %v295_v12 }
 0x13a   :  { %v806_v17 = vpop.f32.mrf.mxu0  ;;  %v814_v20 = vpop.f32.mrf.mxu1 }
 0x13b   :  { %v297_v18 = vcombine.high %v296_v14, %v296_v14  ;;  %v304_v19 = vrot.slane %v296_v14, %v295_v12  ;;  %v159_v14 = vld [vmem:[#allocation2] sm:$0x1] }
 0x13c   :  { %v221_v21 = vpop.f32.mrf.mxu0  ;;  %v285_v23 = vpop.f32.mrf.mxu1 }
 0x13d   :  { %v315_v22 = vrot.slane %v304_v19, %v1271_v16  ;;  %v311_v24 = vrot.slane %v297_v18, %v295_v12  ;;  %v449_v12 = vld [vmem:[#allocation14] sm:$0xf]  ;;  %v422_v19 = vunpack.c.h.bf16 %v1255_v6 }
 0x13e   :  { %v807_v26 = vpop.f32.mrf.mxu0  ;;  %v815_v29 = vpop.f32.mrf.mxu1  ;;  %v523_v13 = vsel %vm521_vm4, %v449_v12, 0 }
 0x13f   :  { %v322_v27 = vadd.f32 %v315_v22, %v282_v15  ;;  %v319_v28 = vrot.slane %v311_v24, %v1271_v16  ;;  %825 = vmatpush3.bf16.msra.mxu1 %v523_v13  ;;  %v161_v15 = vld [vmem:[#allocation7] sm:$0x3] }
 0x140   :  { %838 = vmatprep.subr.bf16.mxu1 %v1120_v0 }
 0x141   :  { %v331_v30 = vadd.f32 %v768_v25, %v322_v27  ;;  %v323_v31 = vadd.f32 %v319_v28, %v285_v23 }
 0x142   :  { %827 = vmatmul.mubr.msk.bf16.vlgmr.msra.gmra.mxu1 %vm517_vm5, %v159_v14 }
 0x143   :  { %879 = vtanh.f32 %v331_v30  ;;  %v332_v32 = vadd.f32 %v768_v25, %v323_v31  ;;  %842 = vmatprep.mubr.msk.bf16.mxu1 %vm1121_vm0, %v1120_v0 }
 0x145   :  { %881 = vtanh.f32 %v332_v32 }
 0x150   :  { %v880_v34 = vpop.eup %879 }
 0x151   :  { %v342_v35 = vmul.f32 %v880_v34, %v769_v33 }
 0x152   :  { %v882_v36 = vpop.eup %881 }
 0x153   :  { %v344_v37 = vsel %vm180_vm1, %v342_v35, 0.0  ;;  %v343_v38 = vmul.f32 %v882_v36, %v769_v33 }
 0x154   :  { %345 = vadd.xlane.f32.xlu0 %v344_v37 }
 0x155   :  { %v347_v39 = vsel %vm180_vm1, %v343_v38, 0.0 }
 0x158   :  { %348 = vadd.xlane.f32.xlu0 %v347_v39 }
 0x1dd   :  { %v346_v41 = vpop.xlane.xlu0 %345 }
 0x1de   :  { %v357_v44 = vrot.slane %v346_v41, %v356_v42 }
 0x1e1   :  { %v349_v43 = vpop.xlane.xlu0 %348 }
 0x1e2   :  { %v361_v45 = vrot.slane %v349_v43, %v356_v42 }
 0x1e4   :  { %v363_v46 = vsel %vm362_vm2, %v361_v45, %v357_v44 }
 0x1e5   :  { %v366_v47 = vsel %vm365_vm3, %v363_v46, -inf }
 0x1e6   :  { %367 = vmax.xlane.f32.xlu1 %v366_v47 }
 0x26f   :  { %v368_v50 = vpop.xlane.xlu1 %367 }
 0x270   :  { %v373_v51 = vrot.slane %v368_v50, %v1271_v16  ;;  %v377_v52 = vrot.slane %v368_v50, %v376_v49 }
 0x272   :  { %v380_v53 = vsub.f32 %v346_v41, %v373_v51  ;;  %v381_v54 = vsub.f32 %v349_v43, %v377_v52  ;;  %v559_v43 = vpop.f32.mrf.mxu1 }
 0x274   :  { %v382_v55 = vmul.f32 1.442695, %v380_v53  ;;  %v384_v56 = vmul.f32 1.442695, %v381_v54  ;;  %v828_v44 = vpop.f32.mrf.mxu1  ;;  %v777_v53 = vld [vmem:[%s1342_s11] ss:$0 sm:$0xff] }
 0x276   :  { %883 = vpow2.f32 %v382_v55  ;;  %v562_v45 = vpop.f32.mrf.mxu1 }
 0x277   :  { %885 = vpow2.f32 %v384_v56 }
 0x278   :  { %v829_v46 = vpop.f32.mrf.mxu1 }
 0x283   :  { %v884_v57 = vpop.eup %883 }
 0x284   :  { %v886_v58 = vpop.eup %885  ;;  %389 = vperm.xlu1 %865, %v884_v57  }
 0x285   :  { %392 = vperm.xlu0 %866, %v886_v58  }
 0x2ff   :  { %v390_v59 = vpop.permute.xlu1 %389 }
 0x300   :  { %v393_v60 = vpop.permute.xlu0 %392  ;;  %v397_v61 = vrot.slane %v390_v59, %v356_v42 }
 0x301   :  { %v401_v62 = vrot.slane %v393_v60, %v356_v42  ;;  %v875_v42 = vld [vmem:[#allocation16] sm:$0xff]  }
 0x303   :  { %v402_v63 = vsel %vm362_vm2, %v401_v62, %v397_v61 }
 0x304   :  { %v404_v1 = vsel %vm365_vm3, %v402_v63, 0.0 }
 0x305   :  { %405 = vadd.xlane.f32.xlu1 %v404_v1 }
 0x38e   :  { %v406_v2 = vpop.xlane.xlu1 %405 }
 0x38f   :  { %887 = vrcp.f32 %v406_v2 }
 0x39c   :  { %v888_v3 = vpop.eup %887 }
 0x39d   :  { %v412_v4 = vrot.slane %v888_v3, %v1271_v16  ;;  %v416_v8 = vrot.slane %v888_v3, %v376_v49  ;;  %v421_v16 = vunpack.c.l.bf16 %v1255_v6 }
 0x39f   :  { %v419_v7 = vmul.f32 %v884_v57, %v412_v4  ;;  %v420_v9 = vmul.f32 %v886_v58, %v416_v8  ;;  %v876_v8 = vld [vmem:[%s1343_s12 + $0x8] sm:$0xff]  }
 0x3a0   :  { %839 = vmatpush3.bf16.msra.mxu1 %v876_v8 }
 0x3a1   :  { %425 = vperm.xlu0 %866, %v419_v7   ;;  %840 = vmatprep.subr.bf16.mxu1 %v1120_v0 }
 0x3a5   :  { %430 = vperm.xlu0 %866, %v420_v9   ;;  %v877_v9 = vld [vmem:[%s1343_s12] sm:$0xff]  }
 0x3a6   :  { %841 = vmatpush3.bf16.msra.mxu1 %v877_v9 }
 0x3a9   :  { %638 = vrot.lane.b32.xlu0 %v161_v15, %s1124_s1 }
 0x41c   :  { %v426_v17 = vpop.permute.xlu0 %425 }
 0x41d   :  { %v433_v18 = vmul.f32 %v426_v17, %v421_v16 }
 0x41f   :  { %v435_v20 = vsel %vm180_vm1, %v433_v18, 0.0 }
 0x420   :  { %v436_v21 = vrot.slane %v435_v20, 4  ;;  %v431_v22 = vpop.permute.xlu0 %430 }
 0x421   :  { %v434_v23 = vmul.f32 %v431_v22, %v422_v19 }
 0x422   :  { %v437_v24 = vadd.f32 %v436_v21, %v435_v20 }
 0x423   :  { %v442_v25 = vsel %vm180_vm1, %v434_v23, 0.0 }
 0x424   :  { %v438_v26 = vrot.slane %v437_v24, 2  ;;  %v443_v27 = vrot.slane %v442_v25, 4  ;;  %v639_v2 = vpop.permute.xlu0 %638 }
 0x426   :  { %v439_v28 = vadd.f32 %v438_v26, %v437_v24  ;;  %v444_v29 = vadd.f32 %v443_v27, %v442_v25 }
 0x428   :  { %v440_v30 = vrot.slane %v439_v28, 1  ;;  %v445_v31 = vrot.slane %v444_v29, 2 }
 0x42a   :  { %v441_v32 = vadd.f32 %v440_v30, %v439_v28  ;;  %v446_v33 = vadd.f32 %v445_v31, %v444_v29 }
 0x42c   :  { %v447_v34 = vrot.slane %v446_v33, 1  ;;  %v454_v35 = vpack.c.bf16 %v441_v32, %v441_v32 }
 0x42e   :  { %v448_v36 = vadd.f32 %v447_v34, %v446_v33  ;;  %v458_v37 = vunpack.c.l.b16 %v454_v35 }
 0x430   :  { %v455_v6 = vpack.c.bf16 %v448_v36, %v448_v36 }
 0x432   :  { %v459_v38 = vunpack.c.l.b16 %v455_v6 }
 0x434   :  { %v460_v39 = vsel %vm362_vm2, %v459_v38, %v458_v37 }
 0x435   :  { %v461_v41 = vpack.c.b16 %v460_v39, %v460_v39 }
 0x437   :  { %821 = vmatmul.mubr.msk.bf16.vlgmr.msra.gmra.mxu0 %vm180_vm1, %v461_v41 }
 0x438   :  { %831 = vmatpush3.bf16.msra.mxu0 %v874_v40  ;;  %834 = vmatprep.mubr.msk.bf16.mxu0 %vm1121_vm0, %v1120_v0 }
 0x439   :  { %832 = vmatprep.subr.bf16.mxu0 %v1120_v0  ;;  %v779_v0 = vld [vmem:[%s1344_s13] ss:$0 sm:$0xff] }
 0x43c   :  { %833 = vmatpush3.bf16.msra.mxu0 %v875_v42 }
 0x43f   :  { %835 = vmatmul.mubr.msk.bf16.vlgmr.msra.gmra.mxu0 %vm180_vm1, %v1253_v5 }
 0x4f7   :  { %v511_v47 = vpop.f32.mrf.mxu0 }
 0x4f8   :  { %v560_v51 = vadd.f32 %v559_v43, %v511_v47 }
 0x4f9   :  { %v822_v48 = vpop.f32.mrf.mxu0 }
 0x4fb   :  { %v514_v49 = vpop.f32.mrf.mxu0 }
 0x4fd   :  { %v823_v50 = vpop.f32.mrf.mxu0 }
 0x4ff   :  { %v615_v52 = vpop.f32.mrf.mxu0 }
 0x500   :  { %v621_v54 = vadd.f32 %v615_v52, %v560_v51 }
 0x501   :  { %v836_v55 = vpop.f32.mrf.mxu0 }
 0x502   :  { %v629_v56 = vadd.f32 %v777_v53, %v621_v54 }
 0x503   :  { %v618_v57 = vpop.f32.mrf.mxu0 }
 0x504   :  { %889 = vtanh.f32 %v629_v56  ;;  %v778_v59 = vmul.f32 -1.442695, %v629_v56 }
 0x505   :  { %v837_v5 = vpop.f32.mrf.mxu0 }
 0x506   :  { %891 = vpow2.f32 %v778_v59 }
 0x511   :  { %v890_v58 = vpop.eup %889 }
 0x512   :  { %643 = vrot.lane.b32.xlu1 %v890_v58, %s1111_s22 }
 0x513   :  { %v892_v60 = vpop.eup %891 }
 0x514   :  { %v633_v61 = vadd.f32 1.0, %v892_v60 }
 0x516   :  { %893 = vrcp.f32 %v633_v61 }
 0x523   :  { %v894_v62 = vpop.eup %893 }
 0x524   :  { %v641_v3 = vmul.f32 %v894_v62, %v639_v2 }
 0x584   :  { %v644_v63 = vpop.permute.xlu1 %643 }
 0x585   :  { %v646_v1 = vmul.f32 %v894_v62, %v644_v63 }
 0x587   :  { %648 = vrot.lane.b32.xlu0 %v646_v1, %s1124_s1 }
 0x5f9   :  { %v649_v4 = vpop.permute.xlu0 %648 }
 0x5fa   :  { %v651_v7 = vadd.f32 %v649_v4, %v641_v3 }
 0x5fc   :  { %895 = vtanh.f32 %v651_v7 }
 0x609   :  { %v896_v10 = vpop.eup %895 }
 0x60a   :  { %654 = vrot.lane.b32.xlu0 %v896_v10, %s1111_s22  ;;  %s1127_s22 = smov [#allocation17]  }
 0x60b   :  { %s748_s2 = sshll.u32 %s1127_s22, 4  ;;  %s749_s2 = int_to_ptr.vmem [resolvable:$true] %s748_s2 }
 0x60c   :  { %s1077_s16 = scalar_lea.vmem %s749_s2, 32  ;;  %p1082_p4 = scmp.lt.s32.totalorder %s749_s2, %s749_s2 }
 0x60d   :  { %p1078_p3 = scmp.ne.s32.totalorder %s749_s2, %s1077_s16  ;;  %p1083_p5 = scmp.lt.s32.totalorder %s1077_s16, %s1077_s16 }
 0x60f   :  { %p1084_p6 = por %p1083_p5, %p1082_p4 }
 0x611   :  { %p1085_p7 = pnand %p1084_p6, %p1078_p3 }
 0x67c   :  { %v655_v11 = vpop.permute.xlu0 %654 }
 0x67d   :  { %v657_v12 = vmul.f32 %v894_v62, %v655_v11 }
 0x67f   :  { %v662_v13 = vpack.c.bf16 %v657_v12, %v657_v12  ;;  %729 = vrot.lane.b32.xlu1 %v657_v12, %s1125_s18 }
 0x681   :  { %671 = vrot.lane.b32.xlu0 %v662_v13, %s1124_s1 }
 0x685   :  { %733 = vrot.lane.b32.xlu0 %v651_v7, %s1126_s0 }
 0x6f1   :  { %v730_v17 = vpop.permute.xlu1 %729 }
 0x6f3   :  { %v672_v14 = vpop.permute.xlu0 %671 }
 0x6f4   :  { %843 = vmatmul.mubr.msk.bf16.vlgmr.msra.gmra.mxu1 %vm180_vm1, %v672_v14 }
 0x6f7   :  { %v734_v19 = vpop.permute.xlu0 %733 }
 0x7b4   :  { %v722_v15 = vpop.f32.mrf.mxu1 }
 0x7b5   :  { %v723_v16 = vadd.f32 %v779_v0, %v722_v15 }
 0x7b6   :  { %v844_v18 = vpop.f32.mrf.mxu1 }
 0x7b7   :  { %v736_v20 = vsel %vm517_vm5, %v723_v16, %v730_v17 }
 0x7b8   :  { %v725_v21 = vpop.f32.mrf.mxu1  ;;  %v738_v22 = vsel %vm737_vm6, %v736_v20, %v734_v19 }
 0x7b9   :  { %v740_v23 = vsel %vm739_vm7, %v738_v22, 0.0 }
 0x7ba   :  { %v845_v24 = vpop.f32.mrf.mxu1  ;;  %741 = vst [vmem:[#allocation17] sm:$0x3] %v740_v23 }
 0x7bb   :  { %1088 = shalt.err (!%p1085_p7)
}
 0x7bc   :  { %751 = dma.vmem_to_hbm [thread:$0]  %s749_s2, 32, %s1345_s14, [#allocation4]  }
 0x7bd   :  { %1107 = dma.done.wait [#allocation4], 32  }
 0x7be   :  { %1108 = vsyncadd [#allocation4], 4294967264 }
 0x7bf   :  { %755 = vsyncpa [#allocation3], 1 }
 0x7c0   :  { %756 = vsyncpa [#allocation6], 1 }
 0x7c1   :  { %757 = vsyncpa [#allocation9], 1 }
 0x7c2   :  { %758 = vsyncpa [#allocation12], 1 }
 0x7c3   :  { %759 = vsyncpa [#allocation15], 1 }
 0x7c4   :  { %760 = vsyncpa [#allocation4], 1 }

</bundles_post_ra>
